<compile_context>
chip_gen: v5e
topology: v5e:2x2
jax: 0.10.0
libtpu: 0.0.40
codegen_flags: <defaults>
</compile_context>

<pallas_src>
import functools

import jax
import jax.numpy as jnp
from jax.experimental import pallas as pl
from jax.experimental.pallas import tpu as pltpu


# ----------------------------- sizing helpers ------------------------------

_LANE_TILE_TARGET = 2048      # lane-axis (last dim) tile target, elements


def _cdiv(a, b):
    return -(-int(a) // int(b))


def _round_up(x, a):
    return ((int(x) + int(a) - 1) // int(a)) * int(a)


def _sublane_align(dtype):
    """Sublane alignment: 8 for 4-byte, 16 for 2-byte, 32 for 1-byte dtypes."""
    itemsize = int(jnp.asarray([], dtype=dtype).dtype.itemsize)
    return max(8, 32 // max(1, itemsize))


def _pick_tile(dim, target, align):
    """Full extent if it fits the target (always a legal block), otherwise the
    largest multiple of `align` <= target; ragged last blocks are handled by
    cdiv grids plus masking (reduce) or padded-writeback drop (apply)."""
    dim, target = int(dim), int(target)
    if dim <= target:
        return dim
    t = max(align, (target // align) * align)
    return min(t, dim)


def _vmem_capacity_bytes():
    try:
        return int(pltpu.get_tpu_info().vmem_capacity_bytes)
    except Exception:
        return 64 << 20      # conservative (v7x per-TC) fallback


_VMEM_CAP = _vmem_capacity_bytes()
if _VMEM_CAP >= (96 << 20):              # v5e / v6e: 128 MiB physical
    _REDUCE_TILE_BYTES_DEFAULT = 8 << 20
    _APPLY_TILE_BYTES_DEFAULT = 4 << 20
else:                                    # v7x: 64 MiB per TensorCore
    _REDUCE_TILE_BYTES_DEFAULT = 6 << 20
    _APPLY_TILE_BYTES_DEFAULT = 3 << 20


def _vmem_limit(streamed_bytes):
    """Explicit scoped-VMEM budget: double-buffered streamed bytes + headroom,
    kept below the physical per-core capacity."""
    lim = max(32 << 20, int(streamed_bytes) + (4 << 20))
    return int(min(lim, int(_VMEM_CAP * 0.9)))


# ------------------------- pass 1: per-channel max -------------------------

def _maxabs_lanes_kernel(x_ref, mx_ref, *, rows, tr, mask_rows):
    # x_ref: (tr, tk) native dtype; mx_ref: (1, tk) f32, resident across r axis.
    a = jnp.abs(x_ref[...])
    if mask_rows:
        r0 = pl.program_id(1) * tr
        ridx = jax.lax.broadcasted_iota(jnp.int32, x_ref.shape, 0) + r0
        a = jnp.where(ridx < rows, a, jnp.zeros_like(a))
    tile_max = jnp.max(a, axis=0, keepdims=True).astype(jnp.float32)

    @pl.when(pl.program_id(1) == 0)
    def _init():
        mx_ref[...] = jnp.zeros_like(mx_ref)       # max(|x|) >= 0

    mx_ref[...] = jnp.maximum(mx_ref[...], tile_max)


def _maxabs_sublanes_kernel(x_ref, mx_ref, *, cols, tc, mask_cols):
    # x_ref: (tk, tc) native dtype; mx_ref: (tk, 1) f32, resident across c axis.
    a = jnp.abs(x_ref[...])
    if mask_cols:
        c0 = pl.program_id(1) * tc
        cidx = jax.lax.broadcasted_iota(jnp.int32, x_ref.shape, 1) + c0
        a = jnp.where(cidx < cols, a, jnp.zeros_like(a))
    tile_max = jnp.max(a, axis=1, keepdims=True).astype(jnp.float32)

    @pl.when(pl.program_id(1) == 0)
    def _init():
        mx_ref[...] = jnp.zeros_like(mx_ref)

    mx_ref[...] = jnp.maximum(mx_ref[...], tile_max)


def _maxabs_channels(x2d, layout, reduce_tile_bytes):
    """Per-channel max(|x|). Returns a (K,) float32 vector."""
    itemsize = int(x2d.dtype.itemsize)
    align = _sublane_align(x2d.dtype)
    nbytes = int(x2d.size) * itemsize

    if layout == "sublanes":                 # x2d: (K, C), channel on sublanes
        K, C = x2d.shape
        tc = _pick_tile(C, _LANE_TILE_TARGET, 128)
        tk_target = max(align, reduce_tile_bytes // max(1, tc * itemsize))
        tk = _pick_tile(K, tk_target, align)
        if _cdiv(K, tk) < 2 and K >= 2 * align:      # keep both v7x TCs busy
            half = _round_up(_cdiv(K, 2), align)
            if half < K:
                tk = half
        nK, nC = _cdiv(K, tk), _cdiv(C, tc)
        mask_cols = (C % tc) != 0
        kernel = functools.partial(_maxabs_sublanes_kernel,
                                   cols=C, tc=tc, mask_cols=mask_cols)
        streamed = 2 * tk * tc * itemsize + 2 * tk * 4
        out = pl.pallas_call(
            kernel,
            out_shape=jax.ShapeDtypeStruct((K, 1), jnp.float32),
            grid=(nK, nC),
            in_specs=[pl.BlockSpec((tk, tc), lambda k, c: (k, c))],
            out_specs=pl.BlockSpec((tk, 1), lambda k, c: (k, 0)),
            compiler_params=pltpu.CompilerParams(
                dimension_semantics=("parallel", "arbitrary"),
                vmem_limit_bytes=_vmem_limit(streamed)),
            cost_estimate=pl.CostEstimate(
                flops=2 * int(x2d.size), transcendentals=0,
                bytes_accessed=nbytes + 4 * K),
        )(x2d)
        return out.reshape(K)

    else:                                    # x2d: (R, K), channel on lanes
        R, K = x2d.shape
        tk = _pick_tile(K, _LANE_TILE_TARGET, 128)
        if _cdiv(K, tk) < 2 and K >= 2 * 128:        # keep both v7x TCs busy
            half = _round_up(_cdiv(K, 2), 128)
            if half < K:
                tk = half
        tr_target = max(align, reduce_tile_bytes // max(1, tk * itemsize))
        tr = _pick_tile(R, tr_target, align)
        nK, nR = _cdiv(K, tk), _cdiv(R, tr)
        mask_rows = (R % tr) != 0
        kernel = functools.partial(_maxabs_lanes_kernel,
                                   rows=R, tr=tr, mask_rows=mask_rows)
        streamed = 2 * tr * tk * itemsize + 2 * tk * 4
        out = pl.pallas_call(
            kernel,
            out_shape=jax.ShapeDtypeStruct((1, K), jnp.float32),
            grid=(nK, nR),
            in_specs=[pl.BlockSpec((tr, tk), lambda k, r: (r, k))],
            out_specs=pl.BlockSpec((1, tk), lambda k, r: (0, k)),
            compiler_params=pltpu.CompilerParams(
                dimension_semantics=("parallel", "arbitrary"),
                vmem_limit_bytes=_vmem_limit(streamed)),
            cost_estimate=pl.CostEstimate(
                flops=2 * int(x2d.size), transcendentals=0,
                bytes_accessed=nbytes + 4 * K),
        )(x2d)
        return out.reshape(K)


# ------------------------------ scale (jnp) ---------------------------------

def _compute_scale(a_maxabs, b_maxabs, alpha, eps):
    """(K,) elementwise chain; XLA fuses it -- no dedicated kernel launch."""
    a = a_maxabs.astype(jnp.float32)
    b = jnp.maximum(b_maxabs.astype(jnp.float32), eps)
    scale = jnp.maximum(a ** alpha / b ** (1.0 - alpha), eps)
    inv_scale = 1.0 / scale
    return scale, inv_scale


# ----------------------------- pass 2: apply --------------------------------

def _apply_scale_kernel(x_ref, s_ref, o_ref):
    # s_ref is (1, tk) or (tk, 1) f32; broadcast multiply in native dtype for
    # sub-32-bit floats (cast the tiny factor block once), f32 otherwise.
    x = x_ref[...]
    s = s_ref[...]
    if jnp.issubdtype(x.dtype, jnp.floating) and x.dtype.itemsize < 4:
        s = s.astype(x.dtype)
    o_ref[...] = (x * s).astype(o_ref.dtype)


def _apply_scale(x2d, factor, layout, apply_tile_bytes):
    """out = x2d * factor, broadcast along the channel axis (per `layout`)."""
    itemsize = int(x2d.dtype.itemsize)
    align = _sublane_align(x2d.dtype)
    nbytes = int(x2d.size) * itemsize
    cost = pl.CostEstimate(flops=int(x2d.size), transcendentals=0,
                           bytes_accessed=2 * nbytes + 4 * int(factor.size))

    if layout == "sublanes":                 # x2d: (K, C)
        K, C = x2d.shape
        tc = _pick_tile(C, _LANE_TILE_TARGET, 128)
        tk_target = max(align, apply_tile_bytes // max(1, tc * itemsize))
        tk = _pick_tile(K, tk_target, align)
        nK, nC = _cdiv(K, tk), _cdiv(C, tc)
        streamed = 4 * tk * tc * itemsize + 2 * tk * 4
        return pl.pallas_call(
            _apply_scale_kernel,
            out_shape=jax.ShapeDtypeStruct((K, C), x2d.dtype),
            grid=(nK, nC),
            in_specs=[pl.BlockSpec((tk, tc), lambda k, c: (k, c)),
                      pl.BlockSpec((tk, 1), lambda k, c: (k, 0))],
            out_specs=pl.BlockSpec((tk, tc), lambda k, c: (k, c)),
            compiler_params=pltpu.CompilerParams(
                dimension_semantics=("parallel", "parallel"),
                vmem_limit_bytes=_vmem_limit(streamed)),
            cost_estimate=cost,
        )(x2d, factor.reshape(K, 1))

    else:                                    # x2d: (R, K)
        R, K = x2d.shape
        tk = _pick_tile(K, _LANE_TILE_TARGET, 128)
        tr_target = max(align, apply_tile_bytes // max(1, tk * itemsize))
        tr = _pick_tile(R, tr_target, align)
        nR, nK = _cdiv(R, tr), _cdiv(K, tk)
        streamed = 4 * tr * tk * itemsize + 2 * tk * 4
        # Channel (k) on the OUTER grid axis: the (1, tk) factor block index is
        # constant across the inner r steps, so it is not re-DMA'd every step.
        return pl.pallas_call(
            _apply_scale_kernel,
            out_shape=jax.ShapeDtypeStruct((R, K), x2d.dtype),
            grid=(nK, nR),
            in_specs=[pl.BlockSpec((tr, tk), lambda k, r: (r, k)),
                      pl.BlockSpec((1, tk), lambda k, r: (0, k))],
            out_specs=pl.BlockSpec((tr, tk), lambda k, r: (r, k)),
            compiler_params=pltpu.CompilerParams(
                dimension_semantics=("parallel", "parallel"),
                vmem_limit_bytes=_vmem_limit(streamed)),
            cost_estimate=cost,
        )(x2d, factor.reshape(1, K))


# ------------------------------ layout plumbing ------------------------------

def _to_channel_2d(x, ch_axis):
    """Flatten to 2D without transposes when the channel axis is first or last."""
    ch_axis = ch_axis % x.ndim
    if ch_axis == x.ndim - 1:
        return x.reshape(-1, x.shape[-1]), "lanes", ("lanes", x.shape)
    if ch_axis == 0:
        return x.reshape(x.shape[0], -1), "sublanes", ("sublanes", x.shape)
    # TODO(synk): a middle channel axis requires a genuine transpose (one extra
    # HBM read+write each way); first/last channel axes avoid it entirely.
    xm = jnp.moveaxis(x, ch_axis, -1)
    return (xm.reshape(-1, xm.shape[-1]), "lanes",
            ("moved", x.shape, ch_axis, xm.shape))


def _from_channel_2d(x2d, info):
    if info[0] in ("lanes", "sublanes"):
        return x2d.reshape(info[1])
    _, _orig, ch_axis, moved_shape = info
    return jnp.moveaxis(x2d.reshape(moved_shape), -1, ch_axis)


# --------------------------------- forward ----------------------------------

def smoothquant_forward(a, b, *, a_ch_axis, b_ch_axis,
                        migration_strength=0.5, scale_min=1e-5, enabled=True,
                        reduce_tile_bytes=None, apply_tile_bytes=None):
    """Returns (a_scaled, b_scaled, scale, a_maxabs, b_maxabs)."""
    if reduce_tile_bytes is None:
        reduce_tile_bytes = _REDUCE_TILE_BYTES_DEFAULT
    if apply_tile_bytes is None:
        apply_tile_bytes = _APPLY_TILE_BYTES_DEFAULT

    a2d, a_layout, a_info = _to_channel_2d(a, a_ch_axis)
    b2d, b_layout, b_info = _to_channel_2d(b, b_ch_axis)
    K = a2d.shape[1] if a_layout == "lanes" else a2d.shape[0]
    Kb = b2d.shape[1] if b_layout == "lanes" else b2d.shape[0]
    assert K == Kb, "channel dims of A and B must match"

    # pass 1: per-channel max(|.|)  (tiled accumulator reductions)
    a_maxabs = _maxabs_channels(a2d, a_layout, reduce_tile_bytes)   # (K,) f32
    b_maxabs = _maxabs_channels(b2d, b_layout, reduce_tile_bytes)   # (K,) f32

    # scale + reciprocal: (K,) elementwise, fused by XLA
    scale, inv_scale = _compute_scale(a_maxabs, b_maxabs,
                                      float(migration_strength), float(scale_min))

    if not enabled:
        # SmoothQuant.enabled == 0: scale is computed/stored, inputs pass
        # through unchanged -- skip the apply pass entirely.
        return a, b, scale, a_maxabs, b_maxabs

    # pass 2: A * (1/scale), B * scale  (embarrassingly parallel multiplies)
    a_s2d = _apply_scale(a2d, inv_scale, a_layout, apply_tile_bytes)
    b_s2d = _apply_scale(b2d, scale, b_layout, apply_tile_bytes)

    return (_from_channel_2d(a_s2d, a_info),
            _from_channel_2d(b_s2d, b_info),
            scale, a_maxabs, b_maxabs)


# --------------------------------- reference ---------------------------------

def _reference(a, b, a_ch_axis, b_ch_axis, alpha, eps):
    a_ax = a_ch_axis % a.ndim
    b_ax = b_ch_axis % b.ndim
    a_dims = tuple(d for d in range(a.ndim) if d != a_ax)
    b_dims = tuple(d for d in range(b.ndim) if d != b_ax)
    a_max = jnp.max(jnp.abs(a), axis=a_dims)
    b_max = jnp.maximum(jnp.max(jnp.abs(b), axis=b_dims), eps)
    scale = jnp.maximum(a_max ** alpha / b_max ** (1.0 - alpha), eps)
    sz_a = [1] * a.ndim
    sz_a[a_ax] = scale.shape[0]
    sz_b = [1] * b.ndim
    sz_b[b_ax] = scale.shape[0]
    return a / scale.reshape(sz_a), b * scale.reshape(sz_b), scale


if __name__ == "__main__":
    key = jax.random.PRNGKey(0)
    ka, kb, kc, kd, ke, kf = jax.random.split(key, 6)
    alpha, eps = 0.5, 1e-5

    # --- case 1: small canonical shapes, f32, channel-last A / channel-first B
    a = jax.random.normal(ka, (2, 8, 32), dtype=jnp.float32)
    b = jax.random.normal(kb, (32, 64), dtype=jnp.float32) * 0.1
    a_s, b_s, scale, a_mx, b_mx = smoothquant_forward(
        a, b, a_ch_axis=2, b_ch_axis=0,
        migration_strength=alpha, scale_min=eps, enabled=True)
    jax.block_until_ready((a_s, b_s, scale, a_mx, b_mx))
    a_ref, b_ref, s_ref = _reference(a, b, 2, 0, alpha, eps)
    assert jnp.allclose(scale, s_ref, rtol=2e-5, atol=1e-6), "scale mismatch"
    assert jnp.allclose(a_s, a_ref, rtol=2e-5, atol=1e-5), "scaled A mismatch"
    assert jnp.allclose(b_s, b_ref, rtol=2e-5, atol=1e-5), "scaled B mismatch"
    # invariance: (A/s) @ (s*B) == A @ B
    assert jnp.allclose(a_s.reshape(-1, 32) @ b_s, a.reshape(-1, 32) @ b,
                        rtol=1e-4, atol=1e-4)

    # --- case 2: bf16, exercises >=2 channel blocks in reduce + bf16 apply math
    a2 = jax.random.normal(kc, (4, 384, 256), dtype=jnp.bfloat16)
    b2 = jax.random.normal(kd, (256, 512), dtype=jnp.bfloat16)
    a2_s, b2_s, scale2, _, _ = smoothquant_forward(
        a2, b2, a_ch_axis=-1, b_ch_axis=0,
        migration_strength=alpha, scale_min=eps, enabled=True)
    jax.block_until_ready((a2_s, b2_s, scale2))
    a2_ref, b2_ref, s2_ref = _reference(a2.astype(jnp.float32),
                                        b2.astype(jnp.float32), -1, 0, alpha, eps)
    assert jnp.allclose(scale2, s2_ref, rtol=2e-5, atol=1e-6)
    assert jnp.allclose(a2_s.astype(jnp.float32), a2_ref, rtol=2e-2, atol=2e-2)
    assert jnp.allclose(b2_s.astype(jnp.float32), b2_ref, rtol=2e-2, atol=2e-2)

    # --- case 3: ragged dims + tiny tile override: exercises cdiv grids, the
    #             masked reduction tails and the multi-step accumulator path.
    a3 = jax.random.normal(ke, (2, 100, 200), dtype=jnp.float32)
    b3 = jax.random.normal(kf, (200, 304), dtype=jnp.float32) * 0.3
    a3_s, b3_s, scale3, _, _ = smoothquant_forward(
        a3, b3, a_ch_axis=-1, b_ch_axis=0,
        migration_strength=alpha, scale_min=eps, enabled=True,
        reduce_tile_bytes=64 * 1024, apply_tile_bytes=64 * 1024)
    jax.block_until_ready((a3_s, b3_s, scale3))
    a3_ref, b3_ref, s3_ref = _reference(a3, b3, -1, 0, alpha, eps)
    assert jnp.allclose(scale3, s3_ref, rtol=2e-5, atol=1e-6), "ragged scale mismatch"
    assert jnp.allclose(a3_s, a3_ref, rtol=2e-5, atol=1e-5), "ragged A mismatch"
    assert jnp.allclose(b3_s, b3_ref, rtol=2e-5, atol=1e-5), "ragged B mismatch"
    assert jnp.allclose(a3_s.reshape(-1, 200) @ b3_s, a3.reshape(-1, 200) @ b3,
                        rtol=1e-4, atol=1e-4)

    print("KERNEL_OK")
</pallas_src>

<mosaic_0001>
module attributes {stable_mosaic.version = 11 : i64} {
  func.func @_maxabs_lanes_kernel(%arg0: i32, %arg1: i32, %arg2: memref<16x32xf32, #tpu.memory_space<vmem>>, %arg3: memref<1x32xf32, #tpu.memory_space<vmem>>) attributes {dimension_semantics = [#tpu.dimension_semantics<parallel>, #tpu.dimension_semantics<arbitrary>], iteration_bounds = array<i64: 1, 1>, scalar_prefetch = 0 : i64, scratch_operands = 0 : i64, tpu.core_type = #tpu.core_type<tc>, window_params = [{transform_indices = @transform_0, window_bounds = array<i64: 16, 32>}, {transform_indices = @transform_1, window_bounds = array<i64: 1, 32>}]} {
    %c0 = arith.constant 0 : index
    %c0_0 = arith.constant 0 : index
    %0 = vector.load %arg2[%c0, %c0_0] : memref<16x32xf32, #tpu.memory_space<vmem>>, vector<16x32xf32>
    %1 = math.absf %0 : vector<16x32xf32>
    %cst = arith.constant dense<0xFF800000> : vector<32xf32>
    %2 = vector.multi_reduction <maximumf>, %1, %cst [0] : vector<16x32xf32> to vector<32xf32>
    %3 = vector.shape_cast %2 : vector<32xf32> to vector<1x32xf32>
    %c0_i32 = arith.constant 0 : i32
    %4 = arith.cmpi eq, %arg1, %c0_i32 : i32
    %5 = arith.extui %4 : i1 to i32
    %c0_i32_1 = arith.constant 0 : i32
    %6 = arith.cmpi ne, %5, %c0_i32_1 : i32
    scf.if %6 {
      %cst_6 = arith.constant 0.000000e+00 : f32
      %10 = vector.broadcast %cst_6 : f32 to vector<1x32xf32>
      %c0_7 = arith.constant 0 : index
      %c0_8 = arith.constant 0 : index
      %11 = vector.load %arg3[%c0_7, %c0_8] : memref<1x32xf32, #tpu.memory_space<vmem>>, vector<1x32xf32>
      tpu.vector_store %arg3[%c0_7, %c0_8], %10 {strides = array<i32>} : memref<1x32xf32, #tpu.memory_space<vmem>>, vector<1x32xf32>,
    } else {
    }
    %c0_2 = arith.constant 0 : index
    %c0_3 = arith.constant 0 : index
    %7 = vector.load %arg3[%c0_2, %c0_3] : memref<1x32xf32, #tpu.memory_space<vmem>>, vector<1x32xf32>
    %8 = arith.maximumf %7, %3 : vector<1x32xf32>
    %c0_4 = arith.constant 0 : index
    %c0_5 = arith.constant 0 : index
    %9 = vector.load %arg3[%c0_4, %c0_5] : memref<1x32xf32, #tpu.memory_space<vmem>>, vector<1x32xf32>
    tpu.vector_store %arg3[%c0_4, %c0_5], %8 {strides = array<i32>} : memref<1x32xf32, #tpu.memory_space<vmem>>, vector<1x32xf32>,
    return
  }
  func.func @transform_0(%arg0: i32, %arg1: i32) -> (i32, i32) {
    %c0_i32 = arith.constant 0 : i32
    return %arg1, %arg0 : i32, i32
  }
  func.func @transform_1(%arg0: i32, %arg1: i32) -> (i32, i32) {
    %c0_i32 = arith.constant 0 : i32
    %c0_i32_0 = arith.constant 0 : i32
    return %c0_i32, %arg0 : i32, i32
  }
}

</mosaic_0001>

<bundles_post_ra>
// kernel: tpu_custom_call.1
= control target key start
LH: loop header
LB: loop body
LE: loop exit
PB: predicated region body
PF: predicated region fallthrough
CT: control target
= control target key end

     0   :  { %6 = vsyncpa [#allocation3], 0  ;;  %s146_s0 = inlined_call_operand.hbm [shape: f32[16,32], index: 0, kind: input, shape index: {}]   ;;  %s147_s1 = inlined_call_operand.hbm [shape: f32[1,32], index: 1, kind: output, shape index: {}]  }
   0x1   :  { %7 = vsyncpa [#allocation4], 0  ;;  %s12_s8 = sshll.u32 %s146_s0, 4  ;;  %s123_s9 = smov [#allocation2]   ;;  %s13_s8 = int_to_ptr.hbm [resolvable:$true] %s12_s8 }
   0x2   :  { %s14_s10 = sshll.u32 %s123_s9, 4  ;;  %s124_s11 = smov 128   ;;  %s15_s10 = int_to_ptr.vmem [resolvable:$true] %s14_s10 }
   0x3   :  { %s125_s12 = smov 8  }
   0x4   :  { %20 = dma.hbm_to_vmem [thread:$0]  %s13_s8, 256, %s15_s10, [#allocation3], %s124_s11, %s124_s11, %s125_s12  }
   0x5   :  { %119 = dma.done.wait [#allocation3], 256  }
   0x6   :  { %120 = vsyncadd [#allocation3], 4294967040  ;;  %vm43_vm0 = vcmask 253952   ;;  %v126_v0 = vmov 0.0   ;;  %v25_v1 = vld [vmem:[#allocation2] sm:$0xff]  ;;  %v26_v2 = vld [vmem:[#allocation2 + $0x8] sm:$0xff] }
   0x7   :  { %44 = vst.msk [vmem:[#allocation5] sm:$0x1] %vm43_vm0, %v126_v0  ;;  %vm29_vm1 = vcmask 261120   ;;  %v27_v3 = vand.u32 2147483647, %v25_v1  ;;  %s127_s0 = smov [#allocation5]  }
   0x8   :  { %v28_v4 = vand.u32 2147483647, %v26_v2  ;;  %s54_s13 = sshll.u32 %s127_s0, 4  ;;  %s56_s16 = sshll.u32 %s147_s1, 4  ;;  %s55_s13 = int_to_ptr.vmem [resolvable:$true] %s54_s13  ;;  %s57_s16 = int_to_ptr.hbm [resolvable:$true] %s56_s16 }
   0x9   :  { %v30_v5 = vsel %vm29_vm1, %v27_v3, -inf }
   0xa   :  { %v31_v6 = vsel %vm29_vm1, %v28_v4, -inf }
   0xb   :  { %v32_v7 = vmax.f32 %v30_v5, %v31_v6 }
   0xd   :  { %v33_v8 = vrot.slane %v32_v7, 4 }
   0xe   :  { %v45_v13 = vld [vmem:[#allocation5] sm:$0x1] }
   0xf   :  { %v34_v9 = vmax.f32 %v32_v7, %v33_v8 }
  0x11   :  { %v35_v10 = vrot.slane %v34_v9, 2 }
  0x13   :  { %v36_v11 = vmax.f32 %v34_v9, %v35_v10 }
  0x15   :  { %v37_v12 = vrot.slane %v36_v11, 1 }
  0x17   :  { %v38_v14 = vmax.f32 %v36_v11, %v37_v12 }
  0x19   :  { %v46_v15 = vmax.f32 %v45_v13, %v38_v14 }
  0x1b   :  { %48 = vst.msk [vmem:[#allocation5] sm:$0x1] %vm43_vm0, %v46_v15 }
  0x1c   :  { %59 = dma.vmem_to_hbm [thread:$0]  %s55_s13, 16, %s57_s16, [#allocation4]  }
  0x1d   :  { %121 = dma.done.wait [#allocation4], 16  }
  0x1e   :  { %122 = vsyncadd [#allocation4], 4294967280 }
  0x1f   :  { %64 = vsyncpa [#allocation3], 1 }
  0x20   :  { %65 = vsyncpa [#allocation4], 1 }

</bundles_post_ra>
